<compile_context>
chip_gen: v7x
topology: tpu7x:2x2x1
jax: 0.10.0
libtpu: 0.0.40
codegen_flags: <defaults>
</compile_context>

<pallas_src>
import functools

import jax
import jax.numpy as jnp
from jax.experimental import pallas as pl
from jax.experimental.pallas import tpu as pltpu


def _dynfilter_kernel(x_ref, f_ref, o_ref, *acc_scratch, cblk):
    # x_ref  : (1, cblk,    H, Wp)  -- x[b, cb*cblk:(cb+1)*cblk]
    # f_ref  : (1, 9*cblk,  H, Wp)  -- filter[b, cb*9*cblk:(cb+1)*9*cblk]
    # o_ref  : (1, 1,       H, Wp)  -- out[b, 0] (block index constant along the C axis)
    # acc_scratch: optional (H, Wp) f32 scratch (only when the output dtype is not f32)
    acc_ref = acc_scratch[0] if acc_scratch else None
    cb = pl.program_id(1)

    @pl.when(cb == 0)
    def _init():
        if acc_ref is not None:
            acc_ref[...] = jnp.zeros_like(acc_ref)
        else:
            o_ref[...] = jnp.zeros_like(o_ref)

    H, Wp = x_ref.shape[2], x_ref.shape[3]

    # Edge-validity masks, built once per tile (hoisted out of the channel/tap loops).
    row = jax.lax.broadcasted_iota(jnp.int32, (H, Wp), 0)
    col = jax.lax.broadcasted_iota(jnp.int32, (H, Wp), 1)
    row_top = row >= 1        # valid for dh = -1 (reads x[h-1])
    row_bot = row <= H - 2    # valid for dh = +1 (reads x[h+1])
    col_lft = col >= 1        # valid for dw = -1 (reads x[w-1])
    col_rgt = col <= Wp - 2   # valid for dw = +1 (reads x[w+1])

    partial = jnp.zeros((H, Wp), jnp.float32)
    for ci in range(cblk):
        x = x_ref[0, ci].astype(jnp.float32)                     # (H, Wp)
        # Two sublane-rolled copies with the row mask pre-applied (8 rolls total per
        # channel instead of 12; no corner logical_ands).
        x_rows = {
            0: x,
            -1: jnp.where(row_top, pltpu.roll(x, shift=1, axis=0), 0.0),
            1: jnp.where(row_bot, pltpu.roll(x, shift=H - 1, axis=0), 0.0),
        }
        for k in range(9):
            dh = k // 3 - 1
            dw = k % 3 - 1
            tap = x_rows[dh]                                      # tap[h,w] = x[h+dh, w]
            if dw == -1:
                tap = jnp.where(col_lft, pltpu.roll(tap, shift=1, axis=1), 0.0)
            elif dw == 1:
                tap = jnp.where(col_rgt, pltpu.roll(tap, shift=Wp - 1, axis=1), 0.0)
            # Stream the matching filter plane (one vload; keeps vreg pressure bounded).
            f_tap = f_ref[0, ci * 9 + k].astype(jnp.float32)
            partial = partial + tap * f_tap

    if acc_ref is not None:
        acc_ref[...] += partial

        @pl.when(cb == pl.num_programs(1) - 1)
        def _finalize():
            o_ref[0, 0] = acc_ref[...].astype(o_ref.dtype)
    else:
        # f32 output: accumulate directly into the resident output block.
        o_ref[0, 0] += partial


def _pick_cblk(C, H, Wp, filt_itemsize, budget_bytes=4 * 2**20):
    """Largest divisor of C whose (9*Cblk, H, Wp) filter block fits the per-block budget."""
    per_channel = 9 * H * Wp * filt_itemsize
    best = 1
    for d in range(1, C + 1):
        if C % d == 0 and d * per_channel <= budget_bytes:
            best = d
    return best


def dyn_filter(x, filt):
    """Pallas DynFilter forward: x (B, C, H, W), filt (B, C*9, H, W) -> (B, 1, H, W)."""
    B, C, H, W = x.shape
    assert filt.shape == (B, 9 * C, H, W), (x.shape, filt.shape)

    # Lane-dense blocks: zero-pad W to a multiple of 128 (pads contribute 0, sliced off).
    Wp = max(128, ((W + 127) // 128) * 128)
    if Wp != W:
        pad = Wp - W
        x = jnp.pad(x, ((0, 0), (0, 0), (0, 0), (0, pad)))
        filt = jnp.pad(filt, ((0, 0), (0, 0), (0, 0), (0, pad)))

    cblk = _pick_cblk(C, H, Wp, filt.dtype.itemsize)
    nc = C // cblk

    out_is_f32 = jnp.dtype(x.dtype) == jnp.float32
    scratch_shapes = [] if out_is_f32 else [pltpu.VMEM((H, Wp), jnp.float32)]

    # VMEM budget: double-buffered x + filter blocks, output block, optional scratch.
    x_blk = cblk * H * Wp * x.dtype.itemsize
    f_blk = 9 * cblk * H * Wp * filt.dtype.itemsize
    o_blk = H * Wp * x.dtype.itemsize
    acc_b = 0 if out_is_f32 else H * Wp * 4
    needed = 2 * (x_blk + f_blk) + 2 * o_blk + acc_b + (4 << 20)  # + headroom
    vmem_limit = int(min(max(needed, 32 << 20), 48 << 20))        # safe on v5e/v6e/v7x

    kernel = functools.partial(_dynfilter_kernel, cblk=cblk)
    out_p = pl.pallas_call(
        kernel,
        out_shape=jax.ShapeDtypeStruct((B, 1, H, Wp), x.dtype),
        grid_spec=pltpu.PrefetchScalarGridSpec(
            num_scalar_prefetch=0,
            grid=(B, nc),
            in_specs=[
                # x: cblk channels per step
                pl.BlockSpec((1, cblk, H, Wp), lambda b, cb: (b, cb, 0, 0)),
                # filter: the 9*cblk planes belonging to those channels (contiguous in HBM)
                pl.BlockSpec((1, 9 * cblk, H, Wp), lambda b, cb: (b, cb, 0, 0)),
            ],
            # output block index constant along the C axis -> resident reduction target
            out_specs=pl.BlockSpec((1, 1, H, Wp), lambda b, cb: (b, 0, 0, 0)),
            scratch_shapes=scratch_shapes,
        ),
        compiler_params=pltpu.CompilerParams(
            dimension_semantics=("parallel", "arbitrary"),
            vmem_limit_bytes=vmem_limit,
        ),
    )(x, filt)

    return out_p[..., :W] if Wp != W else out_p


dyn_filter_jit = jax.jit(dyn_filter)


def dyn_filter_reference(x, filt):
    """Pure-JAX reference matching the PyTorch module exactly."""
    B, C, H, W = x.shape
    xp = jnp.pad(x, ((0, 0), (0, 0), (1, 1), (1, 1)))
    taps = []
    for c in range(C):
        for k in range(9):
            di, dj = k // 3, k % 3
            taps.append(xp[:, c, di:di + H, dj:dj + W])
    x_le = jnp.stack(taps, axis=1)                 # (B, C*9, H, W)
    return jnp.sum(x_le * filt, axis=1, keepdims=True)


if __name__ == "__main__":
    key = jax.random.PRNGKey(0)
    kx, kf = jax.random.split(key)
    B, C, H, W = 2, 4, 16, 16                      # exercises the W->128 lane-pad path
    x = jax.random.normal(kx, (B, C, H, W), dtype=jnp.float32)
    filt = jax.random.normal(kf, (B, 9 * C, H, W), dtype=jnp.float32)

    out = jax.block_until_ready(dyn_filter_jit(x, filt))
    ref = jax.block_until_ready(dyn_filter_reference(x, filt))

    assert out.shape == (B, 1, H, W), out.shape
    max_err = float(jnp.max(jnp.abs(out - ref)))
    assert max_err < 2e-4, f"Pallas DynFilter mismatch vs reference: max abs err = {max_err}"
    print("KERNEL_OK")
</pallas_src>

<mosaic_0001>
module attributes {stable_mosaic.version = 11 : i64} {
  func.func @_dynfilter_kernel(%arg0: i32, %arg1: i32, %arg2: memref<1x4x16x128xf32, #tpu.memory_space<vmem>>, %arg3: memref<1x36x16x128xf32, #tpu.memory_space<vmem>>, %arg4: memref<1x1x16x128xf32, #tpu.memory_space<vmem>>) attributes {dimension_semantics = [#tpu.dimension_semantics<parallel>, #tpu.dimension_semantics<arbitrary>], iteration_bounds = array<i64: 2, 1>, scalar_prefetch = 0 : i64, scratch_operands = 0 : i64, tpu.core_type = #tpu.core_type<tc>, window_params = [{transform_indices = @transform_0, window_bounds = array<i64: 1, 4, 16, 128>}, {transform_indices = @transform_1, window_bounds = array<i64: 1, 36, 16, 128>}, {transform_indices = @transform_2, window_bounds = array<i64: 1, 1, 16, 128>}]} {
    %c0_i32 = arith.constant 0 : i32
    %0 = arith.cmpi eq, %arg1, %c0_i32 : i32
    %1 = arith.extui %0 : i1 to i32
    %c0_i32_0 = arith.constant 0 : i32
    %2 = arith.cmpi ne, %1, %c0_i32_0 : i32
    scf.if %2 {
      %cst_196 = arith.constant 0.000000e+00 : f32
      %268 = vector.broadcast %cst_196 : f32 to vector<1x1x16x128xf32>
      %c0_197 = arith.constant 0 : index
      %c0_198 = arith.constant 0 : index
      %c0_199 = arith.constant 0 : index
      %c0_200 = arith.constant 0 : index
      %269 = vector.load %arg4[%c0_197, %c0_198, %c0_199, %c0_200] : memref<1x1x16x128xf32, #tpu.memory_space<vmem>>, vector<1x1x16x128xf32>
      tpu.vector_store %arg4[%c0_197, %c0_198, %c0_199, %c0_200], %268 {strides = array<i32>} : memref<1x1x16x128xf32, #tpu.memory_space<vmem>>, vector<1x1x16x128xf32>,
    } else {
    }
    %3 = tpu.iota {dimensions = array<i32: 0>} : vector<16x128xi32>
    %4 = tpu.iota {dimensions = array<i32: 1>} : vector<16x128xi32>
    %c1_i32 = arith.constant 1 : i32
    %5 = vector.broadcast %c1_i32 : i32 to vector<16x128xi32>
    %6 = arith.cmpi sge, %3, %5 : vector<16x128xi32>
    %c14_i32 = arith.constant 14 : i32
    %7 = vector.broadcast %c14_i32 : i32 to vector<16x128xi32>
    %8 = arith.cmpi sle, %3, %7 : vector<16x128xi32>
    %c1_i32_1 = arith.constant 1 : i32
    %9 = vector.broadcast %c1_i32_1 : i32 to vector<16x128xi32>
    %10 = arith.cmpi sge, %4, %9 : vector<16x128xi32>
    %c126_i32 = arith.constant 126 : i32
    %11 = vector.broadcast %c126_i32 : i32 to vector<16x128xi32>
    %12 = arith.cmpi sle, %4, %11 : vector<16x128xi32>
    %cst = arith.constant 0.000000e+00 : f32
    %13 = vector.broadcast %cst : f32 to vector<16x128xf32>
    %c0 = arith.constant 0 : index
    %c0_2 = arith.constant 0 : index
    %c0_3 = arith.constant 0 : index
    %c0_4 = arith.constant 0 : index
    %14 = vector.load %arg2[%c0, %c0_2, %c0_3, %c0_4] : memref<1x4x16x128xf32, #tpu.memory_space<vmem>>, vector<1x1x16x128xf32>
    %15 = vector.shape_cast %14 : vector<1x1x16x128xf32> to vector<16x128xf32>
    %c1_i32_5 = arith.constant 1 : i32
    %16 = tpu.dynamic_rotate %15 by %c1_i32_5 dim 0 : vector<16x128xf32>, i32 -> vector<16x128xf32>
    %cst_6 = arith.constant 0.000000e+00 : f32
    %17 = vector.broadcast %cst_6 : f32 to vector<16x128xf32>
    %18 = arith.select %6, %16, %17 : vector<16x128xi1>, vector<16x128xf32>
    %c15_i32 = arith.constant 15 : i32
    %19 = tpu.dynamic_rotate %15 by %c15_i32 dim 0 : vector<16x128xf32>, i32 -> vector<16x128xf32>
    %cst_7 = arith.constant 0.000000e+00 : f32
    %20 = vector.broadcast %cst_7 : f32 to vector<16x128xf32>
    %21 = arith.select %8, %19, %20 : vector<16x128xi1>, vector<16x128xf32>
    %c1_i32_8 = arith.constant 1 : i32
    %22 = tpu.dynamic_rotate %18 by %c1_i32_8 dim 1 : vector<16x128xf32>, i32 -> vector<16x128xf32>
    %cst_9 = arith.constant 0.000000e+00 : f32
    %23 = vector.broadcast %cst_9 : f32 to vector<16x128xf32>
    %24 = arith.select %10, %22, %23 : vector<16x128xi1>, vector<16x128xf32>
    %c0_10 = arith.constant 0 : index
    %c0_11 = arith.constant 0 : index
    %c0_12 = arith.constant 0 : index
    %c0_13 = arith.constant 0 : index
    %25 = vector.load %arg3[%c0_10, %c0_11, %c0_12, %c0_13] : memref<1x36x16x128xf32, #tpu.memory_space<vmem>>, vector<1x1x16x128xf32>
    %26 = vector.shape_cast %25 : vector<1x1x16x128xf32> to vector<16x128xf32>
    %27 = arith.mulf %24, %26 : vector<16x128xf32>
    %28 = arith.addf %13, %27 : vector<16x128xf32>
    %c0_14 = arith.constant 0 : index
    %c1 = arith.constant 1 : index
    %c0_15 = arith.constant 0 : index
    %c0_16 = arith.constant 0 : index
    %29 = vector.load %arg3[%c0_14, %c1, %c0_15, %c0_16] : memref<1x36x16x128xf32, #tpu.memory_space<vmem>>, vector<1x1x16x128xf32>
    %30 = vector.shape_cast %29 : vector<1x1x16x128xf32> to vector<16x128xf32>
    %31 = arith.mulf %18, %30 : vector<16x128xf32>
    %32 = arith.addf %28, %31 : vector<16x128xf32>
    %c127_i32 = arith.constant 127 : i32
    %33 = tpu.dynamic_rotate %18 by %c127_i32 dim 1 : vector<16x128xf32>, i32 -> vector<16x128xf32>
    %cst_17 = arith.constant 0.000000e+00 : f32
    %34 = vector.broadcast %cst_17 : f32 to vector<16x128xf32>
    %35 = arith.select %12, %33, %34 : vector<16x128xi1>, vector<16x128xf32>
    %c0_18 = arith.constant 0 : index
    %c2 = arith.constant 2 : index
    %c0_19 = arith.constant 0 : index
    %c0_20 = arith.constant 0 : index
    %36 = vector.load %arg3[%c0_18, %c2, %c0_19, %c0_20] : memref<1x36x16x128xf32, #tpu.memory_space<vmem>>, vector<1x1x16x128xf32>
    %37 = vector.shape_cast %36 : vector<1x1x16x128xf32> to vector<16x128xf32>
    %38 = arith.mulf %35, %37 : vector<16x128xf32>
    %39 = arith.addf %32, %38 : vector<16x128xf32>
    %c1_i32_21 = arith.constant 1 : i32
    %40 = tpu.dynamic_rotate %15 by %c1_i32_21 dim 1 : vector<16x128xf32>, i32 -> vector<16x128xf32>
    %cst_22 = arith.constant 0.000000e+00 : f32
    %41 = vector.broadcast %cst_22 : f32 to vector<16x128xf32>
    %42 = arith.select %10, %40, %41 : vector<16x128xi1>, vector<16x128xf32>
    %c0_23 = arith.constant 0 : index
    %c3 = arith.constant 3 : index
    %c0_24 = arith.constant 0 : index
    %c0_25 = arith.constant 0 : index
    %43 = vector.load %arg3[%c0_23, %c3, %c0_24, %c0_25] : memref<1x36x16x128xf32, #tpu.memory_space<vmem>>, vector<1x1x16x128xf32>
    %44 = vector.shape_cast %43 : vector<1x1x16x128xf32> to vector<16x128xf32>
    %45 = arith.mulf %42, %44 : vector<16x128xf32>
    %46 = arith.addf %39, %45 : vector<16x128xf32>
    %c0_26 = arith.constant 0 : index
    %c4 = arith.constant 4 : index
    %c0_27 = arith.constant 0 : index
    %c0_28 = arith.constant 0 : index
    %47 = vector.load %arg3[%c0_26, %c4, %c0_27, %c0_28] : memref<1x36x16x128xf32, #tpu.memory_space<vmem>>, vector<1x1x16x128xf32>
    %48 = vector.shape_cast %47 : vector<1x1x16x128xf32> to vector<16x128xf32>
    %49 = arith.mulf %15, %48 : vector<16x128xf32>
    %50 = arith.addf %46, %49 : vector<16x128xf32>
    %c127_i32_29 = arith.constant 127 : i32
    %51 = tpu.dynamic_rotate %15 by %c127_i32_29 dim 1 : vector<16x128xf32>, i32 -> vector<16x128xf32>
    %cst_30 = arith.constant 0.000000e+00 : f32
    %52 = vector.broadcast %cst_30 : f32 to vector<16x128xf32>
    %53 = arith.select %12, %51, %52 : vector<16x128xi1>, vector<16x128xf32>
    %c0_31 = arith.constant 0 : index
    %c5 = arith.constant 5 : index
    %c0_32 = arith.constant 0 : index
    %c0_33 = arith.constant 0 : index
    %54 = vector.load %arg3[%c0_31, %c5, %c0_32, %c0_33] : memref<1x36x16x128xf32, #tpu.memory_space<vmem>>, vector<1x1x16x128xf32>
    %55 = vector.shape_cast %54 : vector<1x1x16x128xf32> to vector<16x128xf32>
    %56 = arith.mulf %53, %55 : vector<16x128xf32>
    %57 = arith.addf %50, %56 : vector<16x128xf32>
    %c1_i32_34 = arith.constant 1 : i32
    %58 = tpu.dynamic_rotate %21 by %c1_i32_34 dim 1 : vector<16x128xf32>, i32 -> vector<16x128xf32>
    %cst_35 = arith.constant 0.000000e+00 : f32
    %59 = vector.broadcast %cst_35 : f32 to vector<16x128xf32>
    %60 = arith.select %10, %58, %59 : vector<16x128xi1>, vector<16x128xf32>
    %c0_36 = arith.constant 0 : index
    %c6 = arith.constant 6 : index
    %c0_37 = arith.constant 0 : index
    %c0_38 = arith.constant 0 : index
    %61 = vector.load %arg3[%c0_36, %c6, %c0_37, %c0_38] : memref<1x36x16x128xf32, #tpu.memory_space<vmem>>, vector<1x1x16x128xf32>
    %62 = vector.shape_cast %61 : vector<1x1x16x128xf32> to vector<16x128xf32>
    %63 = arith.mulf %60, %62 : vector<16x128xf32>
    %64 = arith.addf %57, %63 : vector<16x128xf32>
    %c0_39 = arith.constant 0 : index
    %c7 = arith.constant 7 : index
    %c0_40 = arith.constant 0 : index
    %c0_41 = arith.constant 0 : index
    %65 = vector.load %arg3[%c0_39, %c7, %c0_40, %c0_41] : memref<1x36x16x128xf32, #tpu.memory_space<vmem>>, vector<1x1x16x128xf32>
    %66 = vector.shape_cast %65 : vector<1x1x16x128xf32> to vector<16x128xf32>
    %67 = arith.mulf %21, %66 : vector<16x128xf32>
    %68 = arith.addf %64, %67 : vector<16x128xf32>
    %c127_i32_42 = arith.constant 127 : i32
    %69 = tpu.dynamic_rotate %21 by %c127_i32_42 dim 1 : vector<16x128xf32>, i32 -> vector<16x128xf32>
    %cst_43 = arith.constant 0.000000e+00 : f32
    %70 = vector.broadcast %cst_43 : f32 to vector<16x128xf32>
    %71 = arith.select %12, %69, %70 : vector<16x128xi1>, vector<16x128xf32>
    %c0_44 = arith.constant 0 : index
    %c8 = arith.constant 8 : index
    %c0_45 = arith.constant 0 : index
    %c0_46 = arith.constant 0 : index
    %72 = vector.load %arg3[%c0_44, %c8, %c0_45, %c0_46] : memref<1x36x16x128xf32, #tpu.memory_space<vmem>>, vector<1x1x16x128xf32>
    %73 = vector.shape_cast %72 : vector<1x1x16x128xf32> to vector<16x128xf32>
    %74 = arith.mulf %71, %73 : vector<16x128xf32>
    %75 = arith.addf %68, %74 : vector<16x128xf32>
    %c0_47 = arith.constant 0 : index
    %c1_48 = arith.constant 1 : index
    %c0_49 = arith.constant 0 : index
    %c0_50 = arith.constant 0 : index
    %76 = vector.load %arg2[%c0_47, %c1_48, %c0_49, %c0_50] : memref<1x4x16x128xf32, #tpu.memory_space<vmem>>, vector<1x1x16x128xf32>
    %77 = vector.shape_cast %76 : vector<1x1x16x128xf32> to vector<16x128xf32>
    %c1_i32_51 = arith.constant 1 : i32
    %78 = tpu.dynamic_rotate %77 by %c1_i32_51 dim 0 : vector<16x128xf32>, i32 -> vector<16x128xf32>
    %cst_52 = arith.constant 0.000000e+00 : f32
    %79 = vector.broadcast %cst_52 : f32 to vector<16x128xf32>
    %80 = arith.select %6, %78, %79 : vector<16x128xi1>, vector<16x128xf32>
    %c15_i32_53 = arith.constant 15 : i32
    %81 = tpu.dynamic_rotate %77 by %c15_i32_53 dim 0 : vector<16x128xf32>, i32 -> vector<16x128xf32>
    %cst_54 = arith.constant 0.000000e+00 : f32
    %82 = vector.broadcast %cst_54 : f32 to vector<16x128xf32>
    %83 = arith.select %8, %81, %82 : vector<16x128xi1>, vector<16x128xf32>
    %c1_i32_55 = arith.constant 1 : i32
    %84 = tpu.dynamic_rotate %80 by %c1_i32_55 dim 1 : vector<16x128xf32>, i32 -> vector<16x128xf32>
    %cst_56 = arith.constant 0.000000e+00 : f32
    %85 = vector.broadcast %cst_56 : f32 to vector<16x128xf32>
    %86 = arith.select %10, %84, %85 : vector<16x128xi1>, vector<16x128xf32>
    %c0_57 = arith.constant 0 : index
    %c9 = arith.constant 9 : index
    %c0_58 = arith.constant 0 : index
    %c0_59 = arith.constant 0 : index
    %87 = vector.load %arg3[%c0_57, %c9, %c0_58, %c0_59] : memref<1x36x16x128xf32, #tpu.memory_space<vmem>>, vector<1x1x16x128xf32>
    %88 = vector.shape_cast %87 : vector<1x1x16x128xf32> to vector<16x128xf32>
    %89 = arith.mulf %86, %88 : vector<16x128xf32>
    %90 = arith.addf %75, %89 : vector<16x128xf32>
    %c0_60 = arith.constant 0 : index
    %c10 = arith.constant 10 : index
    %c0_61 = arith.constant 0 : index
    %c0_62 = arith.constant 0 : index
    %91 = vector.load %arg3[%c0_60, %c10, %c0_61, %c0_62] : memref<1x36x16x128xf32, #tpu.memory_space<vmem>>, vector<1x1x16x128xf32>
    %92 = vector.shape_cast %91 : vector<1x1x16x128xf32> to vector<16x128xf32>
    %93 = arith.mulf %80, %92 : vector<16x128xf32>
    %94 = arith.addf %90, %93 : vector<16x128xf32>
    %c127_i32_63 = arith.constant 127 : i32
    %95 = tpu.dynamic_rotate %80 by %c127_i32_63 dim 1 : vector<16x128xf32>, i32 -> vector<16x128xf32>
    %cst_64 = arith.constant 0.000000e+00 : f32
    %96 = vector.broadcast %cst_64 : f32 to vector<16x128xf32>
    %97 = arith.select %12, %95, %96 : vector<16x128xi1>, vector<16x128xf32>
    %c0_65 = arith.constant 0 : index
    %c11 = arith.constant 11 : index
    %c0_66 = arith.constant 0 : index
    %c0_67 = arith.constant 0 : index
    %98 = vector.load %arg3[%c0_65, %c11, %c0_66, %c0_67] : memref<1x36x16x128xf32, #tpu.memory_space<vmem>>, vector<1x1x16x128xf32>
    %99 = vector.shape_cast %98 : vector<1x1x16x128xf32> to vector<16x128xf32>
    %100 = arith.mulf %97, %99 : vector<16x128xf32>
    %101 = arith.addf %94, %100 : vector<16x128xf32>
    %c1_i32_68 = arith.constant 1 : i32
    %102 = tpu.dynamic_rotate %77 by %c1_i32_68 dim 1 : vector<16x128xf32>, i32 -> vector<16x128xf32>
    %cst_69 = arith.constant 0.000000e+00 : f32
    %103 = vector.broadcast %cst_69 : f32 to vector<16x128xf32>
    %104 = arith.select %10, %102, %103 : vector<16x128xi1>, vector<16x128xf32>
    %c0_70 = arith.constant 0 : index
    %c12 = arith.constant 12 : index
    %c0_71 = arith.constant 0 : index
    %c0_72 = arith.constant 0 : index
    %105 = vector.load %arg3[%c0_70, %c12, %c0_71, %c0_72] : memref<1x36x16x128xf32, #tpu.memory_space<vmem>>, vector<1x1x16x128xf32>
    %106 = vector.shape_cast %105 : vector<1x1x16x128xf32> to vector<16x128xf32>
    %107 = arith.mulf %104, %106 : vector<16x128xf32>
    %108 = arith.addf %101, %107 : vector<16x128xf32>
    %c0_73 = arith.constant 0 : index
    %c13 = arith.constant 13 : index
    %c0_74 = arith.constant 0 : index
    %c0_75 = arith.constant 0 : index
    %109 = vector.load %arg3[%c0_73, %c13, %c0_74, %c0_75] : memref<1x36x16x128xf32, #tpu.memory_space<vmem>>, vector<1x1x16x128xf32>
    %110 = vector.shape_cast %109 : vector<1x1x16x128xf32> to vector<16x128xf32>
    %111 = arith.mulf %77, %110 : vector<16x128xf32>
    %112 = arith.addf %108, %111 : vector<16x128xf32>
    %c127_i32_76 = arith.constant 127 : i32
    %113 = tpu.dynamic_rotate %77 by %c127_i32_76 dim 1 : vector<16x128xf32>, i32 -> vector<16x128xf32>
    %cst_77 = arith.constant 0.000000e+00 : f32
    %114 = vector.broadcast %cst_77 : f32 to vector<16x128xf32>
    %115 = arith.select %12, %113, %114 : vector<16x128xi1>, vector<16x128xf32>
    %c0_78 = arith.constant 0 : index
    %c14 = arith.constant 14 : index
    %c0_79 = arith.constant 0 : index
    %c0_80 = arith.constant 0 : index
    %116 = vector.load %arg3[%c0_78, %c14, %c0_79, %c0_80] : memref<1x36x16x128xf32, #tpu.memory_space<vmem>>, vector<1x1x16x128xf32>
    %117 = vector.shape_cast %116 : vector<1x1x16x128xf32> to vector<16x128xf32>
    %118 = arith.mulf %115, %117 : vector<16x128xf32>
    %119 = arith.addf %112, %118 : vector<16x128xf32>
    %c1_i32_81 = arith.constant 1 : i32
    %120 = tpu.dynamic_rotate %83 by %c1_i32_81 dim 1 : vector<16x128xf32>, i32 -> vector<16x128xf32>
    %cst_82 = arith.constant 0.000000e+00 : f32
    %121 = vector.broadcast %cst_82 : f32 to vector<16x128xf32>
    %122 = arith.select %10, %120, %121 : vector<16x128xi1>, vector<16x128xf32>
    %c0_83 = arith.constant 0 : index
    %c15 = arith.constant 15 : index
    %c0_84 = arith.constant 0 : index
    %c0_85 = arith.constant 0 : index
    %123 = vector.load %arg3[%c0_83, %c15, %c0_84, %c0_85] : memref<1x36x16x128xf32, #tpu.memory_space<vmem>>, vector<1x1x16x128xf32>
    %124 = vector.shape_cast %123 : vector<1x1x16x128xf32> to vector<16x128xf32>
    %125 = arith.mulf %122, %124 : vector<16x128xf32>
    %126 = arith.addf %119, %125 : vector<16x128xf32>
    %c0_86 = arith.constant 0 : index
    %c16 = arith.constant 16 : index
    %c0_87 = arith.constant 0 : index
    %c0_88 = arith.constant 0 : index
    %127 = vector.load %arg3[%c0_86, %c16, %c0_87, %c0_88] : memref<1x36x16x128xf32, #tpu.memory_space<vmem>>, vector<1x1x16x128xf32>
    %128 = vector.shape_cast %127 : vector<1x1x16x128xf32> to vector<16x128xf32>
    %129 = arith.mulf %83, %128 : vector<16x128xf32>
    %130 = arith.addf %126, %129 : vector<16x128xf32>
    %c127_i32_89 = arith.constant 127 : i32
    %131 = tpu.dynamic_rotate %83 by %c127_i32_89 dim 1 : vector<16x128xf32>, i32 -> vector<16x128xf32>
    %cst_90 = arith.constant 0.000000e+00 : f32
    %132 = vector.broadcast %cst_90 : f32 to vector<16x128xf32>
    %133 = arith.select %12, %131, %132 : vector<16x128xi1>, vector<16x128xf32>
    %c0_91 = arith.constant 0 : index
    %c17 = arith.constant 17 : index
    %c0_92 = arith.constant 0 : index
    %c0_93 = arith.constant 0 : index
    %134 = vector.load %arg3[%c0_91, %c17, %c0_92, %c0_93] : memref<1x36x16x128xf32, #tpu.memory_space<vmem>>, vector<1x1x16x128xf32>
    %135 = vector.shape_cast %134 : vector<1x1x16x128xf32> to vector<16x128xf32>
    %136 = arith.mulf %133, %135 : vector<16x128xf32>
    %137 = arith.addf %130, %136 : vector<16x128xf32>
    %c0_94 = arith.constant 0 : index
    %c2_95 = arith.constant 2 : index
    %c0_96 = arith.constant 0 : index
    %c0_97 = arith.constant 0 : index
    %138 = vector.load %arg2[%c0_94, %c2_95, %c0_96, %c0_97] : memref<1x4x16x128xf32, #tpu.memory_space<vmem>>, vector<1x1x16x128xf32>
    %139 = vector.shape_cast %138 : vector<1x1x16x128xf32> to vector<16x128xf32>
    %c1_i32_98 = arith.constant 1 : i32
    %140 = tpu.dynamic_rotate %139 by %c1_i32_98 dim 0 : vector<16x128xf32>, i32 -> vector<16x128xf32>
    %cst_99 = arith.constant 0.000000e+00 : f32
    %141 = vector.broadcast %cst_99 : f32 to vector<16x128xf32>
    %142 = arith.select %6, %140, %141 : vector<16x128xi1>, vector<16x128xf32>
    %c15_i32_100 = arith.constant 15 : i32
    %143 = tpu.dynamic_rotate %139 by %c15_i32_100 dim 0 : vector<16x128xf32>, i32 -> vector<16x128xf32>
    %cst_101 = arith.constant 0.000000e+00 : f32
    %144 = vector.broadcast %cst_101 : f32 to vector<16x128xf32>
    %145 = arith.select %8, %143, %144 : vector<16x128xi1>, vector<16x128xf32>
    %c1_i32_102 = arith.constant 1 : i32
    %146 = tpu.dynamic_rotate %142 by %c1_i32_102 dim 1 : vector<16x128xf32>, i32 -> vector<16x128xf32>
    %cst_103 = arith.constant 0.000000e+00 : f32
    %147 = vector.broadcast %cst_103 : f32 to vector<16x128xf32>
    %148 = arith.select %10, %146, %147 : vector<16x128xi1>, vector<16x128xf32>
    %c0_104 = arith.constant 0 : index
    %c18 = arith.constant 18 : index
    %c0_105 = arith.constant 0 : index
    %c0_106 = arith.constant 0 : index
    %149 = vector.load %arg3[%c0_104, %c18, %c0_105, %c0_106] : memref<1x36x16x128xf32, #tpu.memory_space<vmem>>, vector<1x1x16x128xf32>
    %150 = vector.shape_cast %149 : vector<1x1x16x128xf32> to vector<16x128xf32>
    %151 = arith.mulf %148, %150 : vector<16x128xf32>
    %152 = arith.addf %137, %151 : vector<16x128xf32>
    %c0_107 = arith.constant 0 : index
    %c19 = arith.constant 19 : index
    %c0_108 = arith.constant 0 : index
    %c0_109 = arith.constant 0 : index
    %153 = vector.load %arg3[%c0_107, %c19, %c0_108, %c0_109] : memref<1x36x16x128xf32, #tpu.memory_space<vmem>>, vector<1x1x16x128xf32>
    %154 = vector.shape_cast %153 : vector<1x1x16x128xf32> to vector<16x128xf32>
    %155 = arith.mulf %142, %154 : vector<16x128xf32>
    %156 = arith.addf %152, %155 : vector<16x128xf32>
    %c127_i32_110 = arith.constant 127 : i32
    %157 = tpu.dynamic_rotate %142 by %c127_i32_110 dim 1 : vector<16x128xf32>, i32 -> vector<16x128xf32>
    %cst_111 = arith.constant 0.000000e+00 : f32
    %158 = vector.broadcast %cst_111 : f32 to vector<16x128xf32>
    %159 = arith.select %12, %157, %158 : vector<16x128xi1>, vector<16x128xf32>
    %c0_112 = arith.constant 0 : index
    %c20 = arith.constant 20 : index
    %c0_113 = arith.constant 0 : index
    %c0_114 = arith.constant 0 : index
    %160 = vector.load %arg3[%c0_112, %c20, %c0_113, %c0_114] : memref<1x36x16x128xf32, #tpu.memory_space<vmem>>, vector<1x1x16x128xf32>
    %161 = vector.shape_cast %160 : vector<1x1x16x128xf32> to vector<16x128xf32>
    %162 = arith.mulf %159, %161 : vector<16x128xf32>
    %163 = arith.addf %156, %162 : vector<16x128xf32>
    %c1_i32_115 = arith.constant 1 : i32
    %164 = tpu.dynamic_rotate %139 by %c1_i32_115 dim 1 : vector<16x128xf32>, i32 -> vector<16x128xf32>
    %cst_116 = arith.constant 0.000000e+00 : f32
    %165 = vector.broadcast %cst_116 : f32 to vector<16x128xf32>
    %166 = arith.select %10, %164, %165 : vector<16x128xi1>, vector<16x128xf32>
    %c0_117 = arith.constant 0 : index
    %c21 = arith.constant 21 : index
    %c0_118 = arith.constant 0 : index
    %c0_119 = arith.constant 0 : index
    %167 = vector.load %arg3[%c0_117, %c21, %c0_118, %c0_119] : memref<1x36x16x128xf32, #tpu.memory_space<vmem>>, vector<1x1x16x128xf32>
    %168 = vector.shape_cast %167 : vector<1x1x16x128xf32> to vector<16x128xf32>
    %169 = arith.mulf %166, %168 : vector<16x128xf32>
    %170 = arith.addf %163, %169 : vector<16x128xf32>
    %c0_120 = arith.constant 0 : index
    %c22 = arith.constant 22 : index
    %c0_121 = arith.constant 0 : index
    %c0_122 = arith.constant 0 : index
    %171 = vector.load %arg3[%c0_120, %c22, %c0_121, %c0_122] : memref<1x36x16x128xf32, #tpu.memory_space<vmem>>, vector<1x1x16x128xf32>
    %172 = vector.shape_cast %171 : vector<1x1x16x128xf32> to vector<16x128xf32>
    %173 = arith.mulf %139, %172 : vector<16x128xf32>
    %174 = arith.addf %170, %173 : vector<16x128xf32>
    %c127_i32_123 = arith.constant 127 : i32
    %175 = tpu.dynamic_rotate %139 by %c127_i32_123 dim 1 : vector<16x128xf32>, i32 -> vector<16x128xf32>
    %cst_124 = arith.constant 0.000000e+00 : f32
    %176 = vector.broadcast %cst_124 : f32 to vector<16x128xf32>
    %177 = arith.select %12, %175, %176 : vector<16x128xi1>, vector<16x128xf32>
    %c0_125 = arith.constant 0 : index
    %c23 = arith.constant 23 : index
    %c0_126 = arith.constant 0 : index
    %c0_127 = arith.constant 0 : index
    %178 = vector.load %arg3[%c0_125, %c23, %c0_126, %c0_127] : memref<1x36x16x128xf32, #tpu.memory_space<vmem>>, vector<1x1x16x128xf32>
    %179 = vector.shape_cast %178 : vector<1x1x16x128xf32> to vector<16x128xf32>
    %180 = arith.mulf %177, %179 : vector<16x128xf32>
    %181 = arith.addf %174, %180 : vector<16x128xf32>
    %c1_i32_128 = arith.constant 1 : i32
    %182 = tpu.dynamic_rotate %145 by %c1_i32_128 dim 1 : vector<16x128xf32>, i32 -> vector<16x128xf32>
    %cst_129 = arith.constant 0.000000e+00 : f32
    %183 = vector.broadcast %cst_129 : f32 to vector<16x128xf32>
    %184 = arith.select %10, %182, %183 : vector<16x128xi1>, vector<16x128xf32>
    %c0_130 = arith.constant 0 : index
    %c24 = arith.constant 24 : index
    %c0_131 = arith.constant 0 : index
    %c0_132 = arith.constant 0 : index
    %185 = vector.load %arg3[%c0_130, %c24, %c0_131, %c0_132] : memref<1x36x16x128xf32, #tpu.memory_space<vmem>>, vector<1x1x16x128xf32>
    %186 = vector.shape_cast %185 : vector<1x1x16x128xf32> to vector<16x128xf32>
    %187 = arith.mulf %184, %186 : vector<16x128xf32>
    %188 = arith.addf %181, %187 : vector<16x128xf32>
    %c0_133 = arith.constant 0 : index
    %c25 = arith.constant 25 : index
    %c0_134 = arith.constant 0 : index
    %c0_135 = arith.constant 0 : index
    %189 = vector.load %arg3[%c0_133, %c25, %c0_134, %c0_135] : memref<1x36x16x128xf32, #tpu.memory_space<vmem>>, vector<1x1x16x128xf32>
    %190 = vector.shape_cast %189 : vector<1x1x16x128xf32> to vector<16x128xf32>
    %191 = arith.mulf %145, %190 : vector<16x128xf32>
    %192 = arith.addf %188, %191 : vector<16x128xf32>
    %c127_i32_136 = arith.constant 127 : i32
    %193 = tpu.dynamic_rotate %145 by %c127_i32_136 dim 1 : vector<16x128xf32>, i32 -> vector<16x128xf32>
    %cst_137 = arith.constant 0.000000e+00 : f32
    %194 = vector.broadcast %cst_137 : f32 to vector<16x128xf32>
    %195 = arith.select %12, %193, %194 : vector<16x128xi1>, vector<16x128xf32>
    %c0_138 = arith.constant 0 : index
    %c26 = arith.constant 26 : index
    %c0_139 = arith.constant 0 : index
    %c0_140 = arith.constant 0 : index
    %196 = vector.load %arg3[%c0_138, %c26, %c0_139, %c0_140] : memref<1x36x16x128xf32, #tpu.memory_space<vmem>>, vector<1x1x16x128xf32>
    %197 = vector.shape_cast %196 : vector<1x1x16x128xf32> to vector<16x128xf32>
    %198 = arith.mulf %195, %197 : vector<16x128xf32>
    %199 = arith.addf %192, %198 : vector<16x128xf32>
    %c0_141 = arith.constant 0 : index
    %c3_142 = arith.constant 3 : index
    %c0_143 = arith.constant 0 : index
    %c0_144 = arith.constant 0 : index
    %200 = vector.load %arg2[%c0_141, %c3_142, %c0_143, %c0_144] : memref<1x4x16x128xf32, #tpu.memory_space<vmem>>, vector<1x1x16x128xf32>
    %201 = vector.shape_cast %200 : vector<1x1x16x128xf32> to vector<16x128xf32>
    %c1_i32_145 = arith.constant 1 : i32
    %202 = tpu.dynamic_rotate %201 by %c1_i32_145 dim 0 : vector<16x128xf32>, i32 -> vector<16x128xf32>
    %cst_146 = arith.constant 0.000000e+00 : f32
    %203 = vector.broadcast %cst_146 : f32 to vector<16x128xf32>
    %204 = arith.select %6, %202, %203 : vector<16x128xi1>, vector<16x128xf32>
    %c15_i32_147 = arith.constant 15 : i32
    %205 = tpu.dynamic_rotate %201 by %c15_i32_147 dim 0 : vector<16x128xf32>, i32 -> vector<16x128xf32>
    %cst_148 = arith.constant 0.000000e+00 : f32
    %206 = vector.broadcast %cst_148 : f32 to vector<16x128xf32>
    %207 = arith.select %8, %205, %206 : vector<16x128xi1>, vector<16x128xf32>
    %c1_i32_149 = arith.constant 1 : i32
    %208 = tpu.dynamic_rotate %204 by %c1_i32_149 dim 1 : vector<16x128xf32>, i32 -> vector<16x128xf32>
    %cst_150 = arith.constant 0.000000e+00 : f32
    %209 = vector.broadcast %cst_150 : f32 to vector<16x128xf32>
    %210 = arith.select %10, %208, %209 : vector<16x128xi1>, vector<16x128xf32>
    %c0_151 = arith.constant 0 : index
    %c27 = arith.constant 27 : index
    %c0_152 = arith.constant 0 : index
    %c0_153 = arith.constant 0 : index
    %211 = vector.load %arg3[%c0_151, %c27, %c0_152, %c0_153] : memref<1x36x16x128xf32, #tpu.memory_space<vmem>>, vector<1x1x16x128xf32>
    %212 = vector.shape_cast %211 : vector<1x1x16x128xf32> to vector<16x128xf32>
    %213 = arith.mulf %210, %212 : vector<16x128xf32>
    %214 = arith.addf %199, %213 : vector<16x128xf32>
    %c0_154 = arith.constant 0 : index
    %c28 = arith.constant 28 : index
    %c0_155 = arith.constant 0 : index
    %c0_156 = arith.constant 0 : index
    %215 = vector.load %arg3[%c0_154, %c28, %c0_155, %c0_156] : memref<1x36x16x128xf32, #tpu.memory_space<vmem>>, vector<1x1x16x128xf32>
    %216 = vector.shape_cast %215 : vector<1x1x16x128xf32> to vector<16x128xf32>
    %217 = arith.mulf %204, %216 : vector<16x128xf32>
    %218 = arith.addf %214, %217 : vector<16x128xf32>
    %c127_i32_157 = arith.constant 127 : i32
    %219 = tpu.dynamic_rotate %204 by %c127_i32_157 dim 1 : vector<16x128xf32>, i32 -> vector<16x128xf32>
    %cst_158 = arith.constant 0.000000e+00 : f32
    %220 = vector.broadcast %cst_158 : f32 to vector<16x128xf32>
    %221 = arith.select %12, %219, %220 : vector<16x128xi1>, vector<16x128xf32>
    %c0_159 = arith.constant 0 : index
    %c29 = arith.constant 29 : index
    %c0_160 = arith.constant 0 : index
    %c0_161 = arith.constant 0 : index
    %222 = vector.load %arg3[%c0_159, %c29, %c0_160, %c0_161] : memref<1x36x16x128xf32, #tpu.memory_space<vmem>>, vector<1x1x16x128xf32>
    %223 = vector.shape_cast %222 : vector<1x1x16x128xf32> to vector<16x128xf32>
    %224 = arith.mulf %221, %223 : vector<16x128xf32>
    %225 = arith.addf %218, %224 : vector<16x128xf32>
    %c1_i32_162 = arith.constant 1 : i32
    %226 = tpu.dynamic_rotate %201 by %c1_i32_162 dim 1 : vector<16x128xf32>, i32 -> vector<16x128xf32>
    %cst_163 = arith.constant 0.000000e+00 : f32
    %227 = vector.broadcast %cst_163 : f32 to vector<16x128xf32>
    %228 = arith.select %10, %226, %227 : vector<16x128xi1>, vector<16x128xf32>
    %c0_164 = arith.constant 0 : index
    %c30 = arith.constant 30 : index
    %c0_165 = arith.constant 0 : index
    %c0_166 = arith.constant 0 : index
    %229 = vector.load %arg3[%c0_164, %c30, %c0_165, %c0_166] : memref<1x36x16x128xf32, #tpu.memory_space<vmem>>, vector<1x1x16x128xf32>
    %230 = vector.shape_cast %229 : vector<1x1x16x128xf32> to vector<16x128xf32>
    %231 = arith.mulf %228, %230 : vector<16x128xf32>
    %232 = arith.addf %225, %231 : vector<16x128xf32>
    %c0_167 = arith.constant 0 : index
    %c31 = arith.constant 31 : index
    %c0_168 = arith.constant 0 : index
    %c0_169 = arith.constant 0 : index
    %233 = vector.load %arg3[%c0_167, %c31, %c0_168, %c0_169] : memref<1x36x16x128xf32, #tpu.memory_space<vmem>>, vector<1x1x16x128xf32>
    %234 = vector.shape_cast %233 : vector<1x1x16x128xf32> to vector<16x128xf32>
    %235 = arith.mulf %201, %234 : vector<16x128xf32>
    %236 = arith.addf %232, %235 : vector<16x128xf32>
    %c127_i32_170 = arith.constant 127 : i32
    %237 = tpu.dynamic_rotate %201 by %c127_i32_170 dim 1 : vector<16x128xf32>, i32 -> vector<16x128xf32>
    %cst_171 = arith.constant 0.000000e+00 : f32
    %238 = vector.broadcast %cst_171 : f32 to vector<16x128xf32>
    %239 = arith.select %12, %237, %238 : vector<16x128xi1>, vector<16x128xf32>
    %c0_172 = arith.constant 0 : index
    %c32 = arith.constant 32 : index
    %c0_173 = arith.constant 0 : index
    %c0_174 = arith.constant 0 : index
    %240 = vector.load %arg3[%c0_172, %c32, %c0_173, %c0_174] : memref<1x36x16x128xf32, #tpu.memory_space<vmem>>, vector<1x1x16x128xf32>
    %241 = vector.shape_cast %240 : vector<1x1x16x128xf32> to vector<16x128xf32>
    %242 = arith.mulf %239, %241 : vector<16x128xf32>
    %243 = arith.addf %236, %242 : vector<16x128xf32>
    %c1_i32_175 = arith.constant 1 : i32
    %244 = tpu.dynamic_rotate %207 by %c1_i32_175 dim 1 : vector<16x128xf32>, i32 -> vector<16x128xf32>
    %cst_176 = arith.constant 0.000000e+00 : f32
    %245 = vector.broadcast %cst_176 : f32 to vector<16x128xf32>
    %246 = arith.select %10, %244, %245 : vector<16x128xi1>, vector<16x128xf32>
    %c0_177 = arith.constant 0 : index
    %c33 = arith.constant 33 : index
    %c0_178 = arith.constant 0 : index
    %c0_179 = arith.constant 0 : index
    %247 = vector.load %arg3[%c0_177, %c33, %c0_178, %c0_179] : memref<1x36x16x128xf32, #tpu.memory_space<vmem>>, vector<1x1x16x128xf32>
    %248 = vector.shape_cast %247 : vector<1x1x16x128xf32> to vector<16x128xf32>
    %249 = arith.mulf %246, %248 : vector<16x128xf32>
    %250 = arith.addf %243, %249 : vector<16x128xf32>
    %c0_180 = arith.constant 0 : index
    %c34 = arith.constant 34 : index
    %c0_181 = arith.constant 0 : index
    %c0_182 = arith.constant 0 : index
    %251 = vector.load %arg3[%c0_180, %c34, %c0_181, %c0_182] : memref<1x36x16x128xf32, #tpu.memory_space<vmem>>, vector<1x1x16x128xf32>
    %252 = vector.shape_cast %251 : vector<1x1x16x128xf32> to vector<16x128xf32>
    %253 = arith.mulf %207, %252 : vector<16x128xf32>
    %254 = arith.addf %250, %253 : vector<16x128xf32>
    %c127_i32_183 = arith.constant 127 : i32
    %255 = tpu.dynamic_rotate %207 by %c127_i32_183 dim 1 : vector<16x128xf32>, i32 -> vector<16x128xf32>
    %cst_184 = arith.constant 0.000000e+00 : f32
    %256 = vector.broadcast %cst_184 : f32 to vector<16x128xf32>
    %257 = arith.select %12, %255, %256 : vector<16x128xi1>, vector<16x128xf32>
    %c0_185 = arith.constant 0 : index
    %c35 = arith.constant 35 : index
    %c0_186 = arith.constant 0 : index
    %c0_187 = arith.constant 0 : index
    %258 = vector.load %arg3[%c0_185, %c35, %c0_186, %c0_187] : memref<1x36x16x128xf32, #tpu.memory_space<vmem>>, vector<1x1x16x128xf32>
    %259 = vector.shape_cast %258 : vector<1x1x16x128xf32> to vector<16x128xf32>
    %260 = arith.mulf %257, %259 : vector<16x128xf32>
    %261 = arith.addf %254, %260 : vector<16x128xf32>
    %c0_188 = arith.constant 0 : index
    %c0_189 = arith.constant 0 : index
    %c0_190 = arith.constant 0 : index
    %c0_191 = arith.constant 0 : index
    %262 = vector.load %arg4[%c0_188, %c0_189, %c0_190, %c0_191] : memref<1x1x16x128xf32, #tpu.memory_space<vmem>>, vector<1x1x16x128xf32>
    %263 = vector.shape_cast %262 : vector<1x1x16x128xf32> to vector<16x128xf32>
    %264 = arith.addf %263, %261 : vector<16x128xf32>
    %c0_192 = arith.constant 0 : index
    %c0_193 = arith.constant 0 : index
    %c0_194 = arith.constant 0 : index
    %c0_195 = arith.constant 0 : index
    %265 = vector.load %arg4[%c0_192, %c0_193, %c0_194, %c0_195] : memref<1x1x16x128xf32, #tpu.memory_space<vmem>>, vector<1x1x16x128xf32>
    %266 = vector.shape_cast %265 : vector<1x1x16x128xf32> to vector<16x128xf32>
    %267 = vector.shape_cast %264 : vector<16x128xf32> to vector<1x1x16x128xf32>
    tpu.vector_store %arg4[%c0_192, %c0_193, %c0_194, %c0_195], %267 {strides = array<i32>} : memref<1x1x16x128xf32, #tpu.memory_space<vmem>>, vector<1x1x16x128xf32>,
    return
  }
  func.func @transform_0(%arg0: i32, %arg1: i32) -> (i32, i32, i32, i32) {
    %c0_i32 = arith.constant 0 : i32
    %c0_i32_0 = arith.constant 0 : i32
    %c0_i32_1 = arith.constant 0 : i32
    return %arg0, %arg1, %c0_i32, %c0_i32_0 : i32, i32, i32, i32
  }
  func.func @transform_1(%arg0: i32, %arg1: i32) -> (i32, i32, i32, i32) {
    %c0_i32 = arith.constant 0 : i32
    %c0_i32_0 = arith.constant 0 : i32
    %c0_i32_1 = arith.constant 0 : i32
    return %arg0, %arg1, %c0_i32, %c0_i32_0 : i32, i32, i32, i32
  }
  func.func @transform_2(%arg0: i32, %arg1: i32) -> (i32, i32, i32, i32) {
    %c0_i32 = arith.constant 0 : i32
    %c0_i32_0 = arith.constant 0 : i32
    %c0_i32_1 = arith.constant 0 : i32
    %c0_i32_2 = arith.constant 0 : i32
    return %arg0, %c0_i32, %c0_i32_0, %c0_i32_1 : i32, i32, i32, i32
  }
}

</mosaic_0001>

<bundles_post_ra>
// kernel: dyn_filter.1
= control target key start
LH: loop header
LB: loop body
LE: loop exit
PB: predicated region body
PF: predicated region fallthrough
CT: control target
= control target key end

     0   :  { %7 = vsyncpa [#allocation3], 0  ;;  %s1627_s0 = inlined_call_operand.vmem [shape: f32[2,4,16,128], index: 0, kind: input, shape index: {}]   ;;  %s1628_s1 = inlined_call_operand.vmem [shape: f32[2,36,16,128], index: 1, kind: input, shape index: {}]   ;;  %s1629_s2 = inlined_call_operand.hbm [shape: f32[2,1,16,128], index: 2, kind: output, shape index: {}]  }
   0x1   :  { %9 = vsyncpa [#allocation3 + $0x1], 0  ;;  %s1058_s9 = smov 0   ;;  %s1060_s10 = smov 0  }
   0x2   :  { %s1062_s11 = smov 0   ;;  %s1064_s12 = smov 0  }
   0x3   :  { %s1066_s13 = smov 0   ;;  %s1068_s14 = smov 0  }
   0x4 LB: > { %s805_s15 = sadd.s32 4294967295, %s1036_s14   ;;  %s806_s16 = sadd.s32 4294967294, %s1036_s14   ;;  %s1036_s14 = sphi %s1068_s14, %s15_s14   ;;  %s1032_s13 = sphi %s1066_s13, %s1636_s13   ;;  %s1028_s12 = sphi %s1064_s12, %s1635_s12   ;;  %s1024_s11 = sphi %s1062_s11, %s1634_s11   ;;  %s1020_s10 = sphi %s1060_s10, %s1633_s10   ;;  %s1016_s9 = sphi %s1058_s9, %s1632_s9  }
   0x5   : > { %s27_s17 = sadd.s32 1, %s1032_s13  ;;  %s90_s18 = sadd.s32 1, %s1024_s11 }
   0x6   : > { %p29_p0 = scmp.ge.s32.totalorder %s27_s17, 2  ;;  %p100_p1 = scmp.ne.s32.totalorder %s1024_s11, %s1020_s10 }
   0x7   : > { %p101_p2 = scmp.eq.s32.totalorder %s805_s15, 1  ;;  %p106_p3 = scmp.ne.s32.totalorder %s1020_s10, %s1016_s9 }
   0x8   : > { %s1638_s17 = smov (%p29_p0, %s27_s17), 0  ;;  %p107_p5 = scmp.eq.s32.totalorder %s806_s16, 1 }
   0x9   : > { %p1098_p4 = por %p101_p2, %p100_p1  ;;  %s87_s20 = ssub.s32 %s1032_s13, %s1638_s17 }
   0xa   : > { %p809_p6 = scmp.ge.s32.totalorder %s1036_s14, 1  ;;  %p88_p7 = scmp.eq.s32.totalorder %s87_s20, 0 }
   0xb   : > { %p1105_p8 = por %p107_p5, %p106_p3  ;;  %p153_p9 = scmp.lt.s32.totalorder %s1036_s14, 3 }
   0xc   : > { %s1111_s22 = scalar_select %p88_p7, %s1024_s11, %s90_s18  }
   0xd   : > { %p154_p10 = pnand %p809_p6, %p153_p9 }
   0xe   : > { %p191_p11 = scmp.lt.s32.totalorder (!%p154_p10), %s1028_s12, 1  ;;  %v218_v0 = vlaneseq (!%p154_p10)  ;;  %s1038_s28 = smov (!%p154_p10), 1  }
   0xf   : > { %157 = sbr.rel (%p154_p10) target bundleno = 254 (0xfe), region = 28  ;;  %s1039_s29 = smov (!%p154_p10), 127  }
  0x10   : > { %v1118_v1 = vshrl.u32 (!%p154_p10), %v218_v0, 7  ;;  %v1372_v51 = vand.u32 (!%p154_p10), 127, %v218_v0  ;;  %s187_s6 = sand.u32 (!%p154_p10), 1, %s1020_s10   ;;  %s896_s8 = sshll.u32 (!%p154_p10), %s1028_s12, 8 }
  0x11   : > { %s810_s7 = sshll.u32 (!%p154_p10), %s187_s6, 4  ;;  %s1040_s25 = smov (!%p154_p10), [#allocation2]  }
  0x12   : > { %vm233_vm0 = vcmp.lt.s32.totalorder (!%p154_p10), %v1118_v1, 1  ;;  %vm223_vm1 = vcmp.ge.s32.totalorder (!%p154_p10), %v1118_v1, 1  ;;  %v1158_v10 = vadd.s32 (!%p154_p10), 8, %v1118_v1  ;;  %vm240_vm2 = vcmp.lt.s32.totalorder (!%p154_p10), %v1118_v1, 7  ;;  %s189_s15 = scalar_lea.vmem (!%p154_p10), [#allocation2], %s810_s7  ;;  %s962_s26 = sshll.u32 (!%p154_p10), %s1040_s25, 4  ;;  %s963_s26 = int_to_ptr.vmem [resolvable:$false] %s962_s26 }
  0x13   : > { %vm228_vm4 = vcmp.le.s32.totalorder (!%p154_p10), %v1372_v51, 126  ;;  %vm227_vm5 = vcmp.ge.s32.totalorder (!%p154_p10), %v1372_v51, 1  ;;  %s705_s16 = sshll.u32 (!%p154_p10), %s189_s15, 4  ;;  %s1577_s16 = int_to_ptr.vmem [resolvable:$true] %s705_s16 }
  0x14   : > { %vm226_vm3 = vcmp.le.s32.totalorder (!%p154_p10), %v1158_v10, 14  ;;  %p965_p1 = scmp.lt.s32.totalorder (!%p154_p10), %s1577_s16, %s963_s26 }
  0x16   : > { %s1115_s23 = scalar_select %p191_p11, %s1028_s12, 1 }
  0x17   : > { %s958_s12 = scalar_lea.vmem %s1577_s16, 256 }
  0x18   : > { %s895_s24 = sshll.u32 %s1115_s23, 6  ;;  %s897_s30 = smul.u32 576, %s1115_s23 }
  0x19   : > { %s1124_s27 = scalar_lea.vmem %s1627_s0, %s895_s24  ;;  %s1575_s23 = scalar_lea.hbm %s1629_s2, %s896_s8 }
  0x1a   : > { %v1127_v2 = vld [vmem:[%s1124_s27 + $0x8] sm:$0xff]  ;;  %v1130_v3 = vld [vmem:[%s1124_s27] sm:$0xff]  ;;  %v1155_v9 = vld [vmem:[%s1124_s27 + $0x30] sm:$0xff]  ;;  %s1369_s5 = scalar_lea.vmem %s1628_s1, %s897_s30  ;;  %s1581_s24 = scalar_lea.sflag [#allocation3], %s187_s6 }
  0x1b   : > { %279 = vrot.lane.b32.xlu1 %v1127_v2, %s1038_s28  ;;  %277 = vrot.lane.b32.xlu0 %v1130_v3, %s1038_s28  ;;  %v231_v4 = vrot.slane %v1130_v3, 7  ;;  %v232_v5 = vrot.slane %v1127_v2, 7  ;;  %v238_v11 = vrot.slane %v1130_v3, 1  ;;  %v239_v12 = vrot.slane %v1127_v2, 1  ;;  %v1163_v13 = vld [vmem:[%s1124_s27 + $0x38] sm:$0xff]  ;;  %v1178_v19 = vld [vmem:[%s1124_s27 + $0x10] sm:$0xff]  ;;  %p959_p12 = scmp.ne.s32.totalorder %s1577_s16, %s958_s12 }
  0x1c   : > { %v574_v14 = vrot.slane %v1155_v9, 7  ;;  %v575_v15 = vrot.slane %v1163_v13, 7  ;;  %v580_v16 = vrot.slane %v1155_v9, 1  ;;  %v581_v17 = vrot.slane %v1163_v13, 1  ;;  %v1181_v20 = vld [vmem:[%s1124_s27 + $0x18] sm:$0xff]  ;;  %v1252_v35 = vld [vmem:[%s1124_s27 + $0x20] sm:$0xff] }
  0x1d   : > { %v1141_v6 = vsel %vm233_vm0, %v231_v4, %v232_v5  ;;  %v235_v7 = vsel %vm233_vm0, %v232_v5, %v231_v4  ;;  %v242_v18 = vsel %vm240_vm2, %v239_v12, %v238_v11  ;;  %v1199_v23 = vsel %vm240_vm2, %v238_v11, %v239_v12  ;;  %v1255_v36 = vld [vmem:[%s1124_s27 + $0x28] sm:$0xff]  ;;  %v815_v54 = vld [vmem:[%s1369_s5 + $0x18] sm:$0xff]  ;;  %v814_v59 = vld [vmem:[%s1369_s5 + $0x10] sm:$0xff]  ;;  %p960_p13 = pnand %p959_p12, %p1098_p4  ;;  %s964_s27 = scalar_lea.vmem %s963_s26, 512 }
  0x1e   : > { %v1152_v8 = vsel %vm223_vm1, %v235_v7, 0.0  ;;  %v577_v21 = vsel %vm233_vm0, %v575_v15, %v574_v14  ;;  %v1195_v22 = vsel %vm226_vm3, %v242_v18, 0.0  ;;  %v583_v25 = vsel %vm240_vm2, %v581_v17, %v580_v16  ;;  %v252_v55 = vld [vmem:[%s1369_s5 + $0x8] sm:$0xff]  ;;  %v819_v0 = vld [vmem:[%s1369_s5 + $0x38] sm:$0xff]  ;;  %v251_v4 = vld [vmem:[%s1369_s5] sm:$0xff]  ;;  %p966_p2 = scmp.lt.s32.totalorder %s964_s27, %s958_s12 }
  0x1f   : > { %266 = vrot.lane.b32.xlu1 %v1141_v6, %s1039_s29  ;;  %247 = vrot.lane.b32.xlu0 %v1141_v6, %s1038_s28  ;;  %v1203_v24 = vsel %vm223_vm1, %v577_v21, 0.0  ;;  %v346_v26 = vrot.slane %v1178_v19, 7  ;;  %v347_v27 = vrot.slane %v1181_v20, 7  ;;  %v1215_v28 = vsel %vm226_vm3, %v583_v25, 0.0  ;;  %v817_v60 = vld [vmem:[%s1369_s5 + $0x28] sm:$0xff]  ;;  %p961_p0 = pneg %p960_p13 }
  0x20   : > { %v352_v32 = vrot.slane %v1178_v19, 1  ;;  %v353_v33 = vrot.slane %v1181_v20, 1  ;;  %v460_v39 = vrot.slane %v1252_v35, 7  ;;  %v461_v40 = vrot.slane %v1255_v36, 7  ;;  %v821_v5 = vld [vmem:[%s1369_s5 + $0x48] sm:$0xff]  ;;  %p967_p3 = por %p966_p2, %p965_p1 }
  0x21   : > { %v349_v29 = vsel %vm233_vm0, %v347_v27, %v346_v26  ;;  %v1229_v30 = vsel %vm233_vm0, %v346_v26, %v347_v27  ;;  %v466_v44 = vrot.slane %v1252_v35, 1  ;;  %v467_v45 = vrot.slane %v1255_v36, 1  ;;  %v820_v26 = vld [vmem:[%s1369_s5 + $0x40] sm:$0xff] }
  0x22   : > { %v1233_v31 = vsel %vm223_vm1, %v349_v29, 0.0  ;;  %v355_v34 = vsel %vm240_vm2, %v353_v33, %v352_v32  ;;  %v1267_v38 = vsel %vm240_vm2, %v352_v32, %v353_v33  ;;  %v463_v41 = vsel %vm233_vm0, %v461_v40, %v460_v39  ;;  %v823_v29 = vld [vmem:[%s1369_s5 + $0x58] sm:$0xff]  ;;  %p968_p5 = pnand %p967_p3, %p961_p0 }
  0x23   : > { %264 = vrot.lane.b32.xlu1 %v1152_v8, %s1039_s29  ;;  %245 = vrot.lane.b32.xlu0 %v1152_v8, %s1038_s28  ;;  %v1263_v37 = vsel %vm226_vm3, %v355_v34, 0.0  ;;  %v1283_v42 = vsel %vm233_vm0, %v460_v39, %v461_v40  ;;  %v1287_v43 = vsel %vm223_vm1, %v463_v41, 0.0  ;;  %v469_v46 = vsel %vm240_vm2, %v467_v45, %v466_v44 }
  0x24   : > { %v1311_v47 = vsel %vm226_vm3, %v469_v46, 0.0  ;;  %v1315_v48 = vsel %vm240_vm2, %v466_v44, %v467_v45  ;;  %v1331_v49 = vsel %vm233_vm0, %v574_v14, %v575_v15  ;;  %v1355_v50 = vsel %vm240_vm2, %v580_v16, %v581_v17  ;;  %v816_v14 = vld [vmem:[%s1369_s5 + $0x20] sm:$0xff]  ;;  %v827_v44 = vld [vmem:[%s1369_s5 + $0x78] sm:$0xff] }
  0x25   : > { %v261_v56 = vmul.f32 %v815_v54, %v1141_v6  ;;  %v260_v6 = vmul.f32 %v814_v59, %v1152_v8  ;;  %v294_v25 = vmul.f32 %v821_v5, %v1127_v2  ;;  %v818_v8 = vld [vmem:[%s1369_s5 + $0x30] sm:$0xff] }
  0x27   : > { %299 = vrot.lane.b32.xlu1 %v1127_v2, %s1039_s29  ;;  %297 = vrot.lane.b32.xlu0 %v1130_v3, %s1039_s29  ;;  %v293_v2 = vmul.f32 %v820_v26, %v1130_v3 }
  0x2b   : > { %312 = vrot.lane.b32.xlu1 %v1195_v22, %s1038_s28  ;;  %310 = vrot.lane.b32.xlu0 %v1199_v23, %s1038_s28 }
  0x2f   : > { %332 = vrot.lane.b32.xlu1 %v1195_v22, %s1039_s29  ;;  %330 = vrot.lane.b32.xlu0 %v1199_v23, %s1039_s29 }
  0x33   : > { %360 = vrot.lane.b32.xlu1 %v1229_v30, %s1038_s28  ;;  %358 = vrot.lane.b32.xlu0 %v1233_v31, %s1038_s28 }
  0x37   : > { %380 = vrot.lane.b32.xlu1 %v1229_v30, %s1039_s29  ;;  %378 = vrot.lane.b32.xlu0 %v1233_v31, %s1039_s29 }
  0x3b   : > { %393 = vrot.lane.b32.xlu1 %v1181_v20, %s1038_s28  ;;  %391 = vrot.lane.b32.xlu0 %v1178_v19, %s1038_s28 }
  0x3f   : > { %413 = vrot.lane.b32.xlu1 %v1181_v20, %s1039_s29  ;;  %411 = vrot.lane.b32.xlu0 %v1178_v19, %s1039_s29 }
  0x43   : > { %426 = vrot.lane.b32.xlu1 %v1263_v37, %s1038_s28  ;;  %424 = vrot.lane.b32.xlu0 %v1267_v38, %s1038_s28 }
  0x47   : > { %446 = vrot.lane.b32.xlu1 %v1263_v37, %s1039_s29  ;;  %444 = vrot.lane.b32.xlu0 %v1267_v38, %s1039_s29 }
  0x4b   : > { %474 = vrot.lane.b32.xlu1 %v1283_v42, %s1038_s28  ;;  %472 = vrot.lane.b32.xlu0 %v1287_v43, %s1038_s28 }
  0x4f   : > { %494 = vrot.lane.b32.xlu1 %v1283_v42, %s1039_s29  ;;  %492 = vrot.lane.b32.xlu0 %v1287_v43, %s1039_s29 }
  0x53   : > { %507 = vrot.lane.b32.xlu1 %v1255_v36, %s1038_s28  ;;  %505 = vrot.lane.b32.xlu0 %v1252_v35, %s1038_s28 }
  0x57   : > { %527 = vrot.lane.b32.xlu1 %v1255_v36, %s1039_s29  ;;  %525 = vrot.lane.b32.xlu0 %v1252_v35, %s1039_s29 }
  0x5b   : > { %540 = vrot.lane.b32.xlu1 %v1311_v47, %s1038_s28  ;;  %538 = vrot.lane.b32.xlu0 %v1315_v48, %s1038_s28 }
  0x5f   : > { %560 = vrot.lane.b32.xlu1 %v1311_v47, %s1039_s29  ;;  %558 = vrot.lane.b32.xlu0 %v1315_v48, %s1039_s29 }
  0x63   : > { %588 = vrot.lane.b32.xlu1 %v1331_v49, %s1038_s28  ;;  %586 = vrot.lane.b32.xlu0 %v1203_v24, %s1038_s28 }
  0x67   : > { %608 = vrot.lane.b32.xlu1 %v1331_v49, %s1039_s29  ;;  %606 = vrot.lane.b32.xlu0 %v1203_v24, %s1039_s29 }
  0x6b   : > { %621 = vrot.lane.b32.xlu1 %v1163_v13, %s1038_s28  ;;  %619 = vrot.lane.b32.xlu0 %v1155_v9, %s1038_s28 }
  0x6f   : > { %641 = vrot.lane.b32.xlu1 %v1163_v13, %s1039_s29  ;;  %639 = vrot.lane.b32.xlu0 %v1155_v9, %s1039_s29 }
  0x73   : > { %654 = vrot.lane.b32.xlu1 %v1215_v28, %s1038_s28  ;;  %652 = vrot.lane.b32.xlu0 %v1355_v50, %s1038_s28 }
  0x77   : > { %674 = vrot.lane.b32.xlu1 %v1215_v28, %s1039_s29  ;;  %672 = vrot.lane.b32.xlu0 %v1355_v50, %s1039_s29 }
  0x8d   : > { %v280_v52 = vpop.permute.xlu1 %279  ;;  %v278_v53 = vpop.permute.xlu0 %277 }
  0x8e   : > { %v282_v1 = vsel %vm227_vm5, %v280_v52, 0.0  ;;  %v281_v27 = vsel %vm227_vm5, %v278_v53, 0.0  ;;  %v822_v53 = vld [vmem:[%s1369_s5 + $0x50] sm:$0xff] }
  0x8f   : > { %v287_v17 = vmul.f32 %v819_v0, %v282_v1  ;;  %v286_v45 = vmul.f32 %v818_v8, %v281_v27  ;;  %v832_v27 = vld [vmem:[%s1369_s5 + $0x90] sm:$0xff] }
  0x91   : > { %v267_v57 = vpop.permute.xlu1 %266  ;;  %v248_v58 = vpop.permute.xlu0 %247 }
  0x92   : > { %v269_v61 = vsel %vm228_vm4, %v267_v57, 0.0  ;;  %v250_v62 = vsel %vm227_vm5, %v248_v58, 0.0 }
  0x93   : > { %v254_v63 = vmul.f32 %v252_v55, %v250_v62  ;;  %v274_v7 = vmul.f32 %v817_v60, %v269_v61  ;;  %v327_v60 = vmul.f32 %v827_v44, %v1195_v22  ;;  %v826_v61 = vld [vmem:[%s1369_s5 + $0x70] sm:$0xff]  ;;  %v824_v62 = vld [vmem:[%s1369_s5 + $0x60] sm:$0xff] }
  0x94   : > { %v326_v22 = vmul.f32 %v826_v61, %v1199_v23  ;;  %v833_v23 = vld [vmem:[%s1369_s5 + $0x98] sm:$0xff] }
  0x95   : > { %v263_v10 = vadd.f32 %v261_v56, %v254_v63  ;;  %v265_v11 = vpop.permute.xlu1 %264  ;;  %v246_v12 = vpop.permute.xlu0 %245  ;;  %v825_v56 = vld [vmem:[%s1369_s5 + $0x68] sm:$0xff] }
  0x96   : > { %v268_v15 = vsel %vm228_vm4, %v265_v11, 0.0  ;;  %v249_v16 = vsel %vm227_vm5, %v246_v12, 0.0 }
  0x97   : > { %v276_v18 = vadd.f32 %v274_v7, %v263_v10  ;;  %v253_v21 = vmul.f32 %v251_v4, %v249_v16  ;;  %v273_v32 = vmul.f32 %v816_v14, %v268_v15  ;;  %v828_v16 = vld [vmem:[%s1369_s5 + $0x80] sm:$0xff] }
  0x99   : > { %v262_v33 = vadd.f32 %v260_v6, %v253_v21  ;;  %v300_v34 = vpop.permute.xlu1 %299  ;;  %v289_v39 = vadd.f32 %v287_v17, %v276_v18  ;;  %v298_v40 = vpop.permute.xlu0 %297  ;;  %v829_v6 = vld [vmem:[%s1369_s5 + $0x88] sm:$0xff]  ;;  %v834_v21 = vld [vmem:[%s1369_s5 + $0xa0] sm:$0xff] }
  0x9a   : > { %v302_v41 = vsel %vm228_vm4, %v300_v34, 0.0  ;;  %v301_v55 = vsel %vm228_vm4, %v298_v40, 0.0  ;;  %v835_v18 = vld [vmem:[%s1369_s5 + $0xa8] sm:$0xff]  ;;  %v374_v40 = vmul.f32 %v834_v21, %v1233_v31 }
  0x9b   : > { %v275_v46 = vadd.f32 %v273_v32, %v262_v33  ;;  %v296_v52 = vadd.f32 %v294_v25, %v289_v39  ;;  %v307_v54 = vmul.f32 %v823_v29, %v302_v41  ;;  %v306_v4 = vmul.f32 %v822_v53, %v301_v55  ;;  %v836_v53 = vld [vmem:[%s1369_s5 + $0xb0] sm:$0xff] }
  0x9c   : > { %v375_v39 = vmul.f32 %v835_v18, %v1229_v30 }
  0x9d   : > { %v288_v57 = vadd.f32 %v286_v45, %v275_v46  ;;  %v313_v58 = vpop.permute.xlu1 %312  ;;  %v311_v59 = vpop.permute.xlu0 %310  ;;  %v309_v0 = vadd.f32 %v307_v54, %v296_v52  ;;  %v837_v54 = vld [vmem:[%s1369_s5 + $0xb8] sm:$0xff] }
  0x9e   : > { %v315_v3 = vsel %vm227_vm5, %v313_v58, 0.0  ;;  %v314_v63 = vsel %vm227_vm5, %v311_v59, 0.0 }
  0x9f   : > { %v295_v1 = vadd.f32 %v293_v2, %v288_v57  ;;  %v320_v5 = vmul.f32 %v825_v56, %v315_v3  ;;  %v319_v11 = vmul.f32 %v824_v62, %v314_v63  ;;  %v841_v62 = vld [vmem:[%s1369_s5 + $0xd8] sm:$0xff]  ;;  %v840_v63 = vld [vmem:[%s1369_s5 + $0xd0] sm:$0xff] }
  0xa1   : > { %v308_v7 = vadd.f32 %v306_v4, %v295_v1  ;;  %v322_v10 = vadd.f32 %v320_v5, %v309_v0  ;;  %v333_v12 = vpop.permute.xlu1 %332  ;;  %v331_v14 = vpop.permute.xlu0 %330  ;;  %v839_v0 = vld [vmem:[%s1369_s5 + $0xc8] sm:$0xff]  ;;  %v838_v1 = vld [vmem:[%s1369_s5 + $0xc0] sm:$0xff] }
  0xa2   : > { %v335_v15 = vsel %vm228_vm4, %v333_v12, 0.0  ;;  %v334_v17 = vsel %vm228_vm4, %v331_v14, 0.0 }
  0xa3   : > { %v321_v25 = vadd.f32 %v319_v11, %v308_v7  ;;  %v329_v26 = vadd.f32 %v327_v60, %v322_v10  ;;  %v340_v8 = vmul.f32 %v829_v6, %v335_v15  ;;  %v339_v32 = vmul.f32 %v828_v16, %v334_v17  ;;  %v843_v16 = vld [vmem:[%s1369_s5 + $0xe8] sm:$0xff]  ;;  %v842_v17 = vld [vmem:[%s1369_s5 + $0xe0] sm:$0xff] }
  0xa4   : > { %v408_v7 = vmul.f32 %v841_v62, %v1181_v20  ;;  %v407_v10 = vmul.f32 %v840_v63, %v1178_v19  ;;  %v846_v19 = vld [vmem:[%s1369_s5 + $0x100] sm:$0xff] }
  0xa5   : > { %v328_v29 = vadd.f32 %v326_v22, %v321_v25  ;;  %v361_v33 = vpop.permute.xlu1 %360  ;;  %v359_v34 = vpop.permute.xlu0 %358  ;;  %v342_v44 = vadd.f32 %v340_v8, %v329_v26 }
  0xa6   : > { %v363_v41 = vsel %vm227_vm5, %v361_v33, 0.0  ;;  %v362_v2 = vsel %vm227_vm5, %v359_v34, 0.0  ;;  %v845_v34 = vld [vmem:[%s1369_s5 + $0xf8] sm:$0xff] }
  0xa7   : > { %v341_v45 = vadd.f32 %v339_v32, %v328_v29  ;;  %v368_v46 = vmul.f32 %v833_v23, %v363_v41  ;;  %v367_v52 = vmul.f32 %v832_v27, %v362_v2  ;;  %v847_v23 = vld [vmem:[%s1369_s5 + $0x108] sm:$0xff] }
  0xa8   : > { %v441_v2 = vmul.f32 %v847_v23, %v1263_v37 }
  0xa9   : > { %v370_v55 = vadd.f32 %v368_v46, %v342_v44  ;;  %v369_v30 = vadd.f32 %v367_v52, %v341_v45  ;;  %v381_v56 = vpop.permute.xlu1 %380  ;;  %v379_v31 = vpop.permute.xlu0 %378  ;;  %v440_v44 = vmul.f32 %v846_v19, %v1267_v38 }
  0xaa   : > { %v383_v57 = vsel %vm228_vm4, %v381_v56, 0.0  ;;  %v382_v58 = vsel %vm228_vm4, %v379_v31, 0.0  ;;  %v848_v56 = vld [vmem:[%s1369_s5 + $0x110] sm:$0xff] }
  0xab   : > { %v377_v59 = vadd.f32 %v375_v39, %v370_v55  ;;  %v388_v60 = vmul.f32 %v837_v54, %v383_v57  ;;  %v376_v61 = vadd.f32 %v374_v40, %v369_v30  ;;  %v387_v3 = vmul.f32 %v836_v53, %v382_v58  ;;  %v844_v39 = vld [vmem:[%s1369_s5 + $0xf0] sm:$0xff]  ;;  %v849_v30 = vld [vmem:[%s1369_s5 + $0x118] sm:$0xff] }
  0xad   : > { %v394_v4 = vpop.permute.xlu1 %393  ;;  %v392_v5 = vpop.permute.xlu0 %391  ;;  %v390_v11 = vadd.f32 %v388_v60, %v377_v59  ;;  %v389_v12 = vadd.f32 %v387_v3, %v376_v61  ;;  %v855_v60 = vld [vmem:[%s1369_s5 + $0x138] sm:$0xff]  ;;  %v854_v61 = vld [vmem:[%s1369_s5 + $0x130] sm:$0xff] }
  0xae   : > { %v396_v6 = vsel %vm227_vm5, %v394_v4, 0.0  ;;  %v395_v22 = vsel %vm227_vm5, %v392_v5, 0.0  ;;  %v852_v4 = vld [vmem:[%s1369_s5 + $0x120] sm:$0xff] }
  0xaf   : > { %v401_v14 = vmul.f32 %v839_v0, %v396_v6  ;;  %v400_v15 = vmul.f32 %v838_v1, %v395_v22  ;;  %v853_v1 = vld [vmem:[%s1369_s5 + $0x128] sm:$0xff]  ;;  %v489_v22 = vmul.f32 %v855_v60, %v1283_v42 }
  0xb1   : > { %v403_v18 = vadd.f32 %v401_v14, %v390_v11  ;;  %v402_v21 = vadd.f32 %v400_v15, %v389_v12  ;;  %v414_v25 = vpop.permute.xlu1 %413  ;;  %v412_v26 = vpop.permute.xlu0 %411 }
  0xb2   : > { %v416_v8 = vsel %vm228_vm4, %v414_v25, 0.0  ;;  %v415_v20 = vsel %vm228_vm4, %v412_v26, 0.0 }
  0xb3   : > { %v410_v27 = vadd.f32 %v408_v7, %v403_v18  ;;  %v421_v29 = vmul.f32 %v843_v16, %v416_v8  ;;  %v409_v32 = vadd.f32 %v407_v10, %v402_v21  ;;  %v420_v33 = vmul.f32 %v842_v17, %v415_v20  ;;  %v857_v17 = vld [vmem:[%s1369_s5 + $0x148] sm:$0xff]  ;;  %v856_v18 = vld [vmem:[%s1369_s5 + $0x140] sm:$0xff] }
  0xb4   : > { %v488_v7 = vmul.f32 %v854_v61, %v1287_v43 }
  0xb5   : > { %v427_v40 = vpop.permute.xlu1 %426  ;;  %v425_v41 = vpop.permute.xlu0 %424  ;;  %v423_v52 = vadd.f32 %v421_v29, %v410_v27  ;;  %v422_v54 = vadd.f32 %v420_v33, %v409_v32  ;;  %v861_v29 = vld [vmem:[%s1369_s5 + $0x168] sm:$0xff]  ;;  %v860_v32 = vld [vmem:[%s1369_s5 + $0x160] sm:$0xff]  ;;  %v859_v33 = vld [vmem:[%s1369_s5 + $0x158] sm:$0xff] }
  0xb6   : > { %v429_v45 = vsel %vm227_vm5, %v427_v40, 0.0  ;;  %v428_v46 = vsel %vm227_vm5, %v425_v41, 0.0 }
  0xb7   : > { %v434_v53 = vmul.f32 %v845_v34, %v429_v45  ;;  %v433_v55 = vmul.f32 %v844_v39, %v428_v46  ;;  %v858_v34 = vld [vmem:[%s1369_s5 + $0x150] sm:$0xff]  ;;  %v521_v45 = vmul.f32 %v860_v32, %v1252_v35 }
  0xb8   : > { %v866_v35 = vld [vmem:[%s1369_s5 + $0x190] sm:$0xff] }
  0xb9   : > { %v436_v31 = vadd.f32 %v434_v53, %v423_v52  ;;  %v435_v37 = vadd.f32 %v433_v55, %v422_v54  ;;  %v447_v57 = vpop.permute.xlu1 %446  ;;  %v445_v58 = vpop.permute.xlu0 %444  ;;  %v863_v55 = vld [vmem:[%s1369_s5 + $0x178] sm:$0xff] }
  0xba   : > { %v449_v38 = vsel %vm228_vm4, %v447_v57, 0.0  ;;  %v448_v59 = vsel %vm228_vm4, %v445_v58, 0.0 }
  0xbb   : > { %v443_v3 = vadd.f32 %v441_v2, %v436_v31  ;;  %v454_v62 = vmul.f32 %v849_v30, %v449_v38  ;;  %v442_v63 = vadd.f32 %v440_v44, %v435_v37  ;;  %v453_v0 = vmul.f32 %v848_v56, %v448_v59  ;;  %v862_v30 = vld [vmem:[%s1369_s5 + $0x170] sm:$0xff]  ;;  %v867_v38 = vld [vmem:[%s1369_s5 + $0x198] sm:$0xff] }
  0xbc   : > { %v522_v44 = vmul.f32 %v861_v29, %v1255_v36 }
  0xbd   : > { %v475_v5 = vpop.permute.xlu1 %474  ;;  %v473_v6 = vpop.permute.xlu0 %472  ;;  %v456_v12 = vadd.f32 %v454_v62, %v443_v3  ;;  %v455_v14 = vadd.f32 %v453_v0, %v442_v63  ;;  %v865_v62 = vld [vmem:[%s1369_s5 + $0x188] sm:$0xff]  ;;  %v864_v63 = vld [vmem:[%s1369_s5 + $0x180] sm:$0xff] }
  0xbe   : > { %v477_v10 = vsel %vm227_vm5, %v475_v5, 0.0  ;;  %v476_v11 = vsel %vm227_vm5, %v473_v6, 0.0  ;;  %v554_v5 = vmul.f32 %v866_v35, %v1315_v48 }
  0xbf   : > { %v482_v15 = vmul.f32 %v853_v1, %v477_v10  ;;  %v481_v16 = vmul.f32 %v852_v4, %v476_v11  ;;  %v555_v4 = vmul.f32 %v867_v38, %v1311_v47  ;;  %v878_v38 = vld [vmem:[%s1369_s5 + $0x1e0] sm:$0xff] }
  0xc1   : > { %v484_v21 = vadd.f32 %v482_v15, %v456_v12  ;;  %v483_v42 = vadd.f32 %v481_v16, %v455_v14  ;;  %v495_v25 = vpop.permute.xlu1 %494  ;;  %v493_v43 = vpop.permute.xlu0 %492  ;;  %v869_v14 = vld [vmem:[%s1369_s5 + $0x1a8] sm:$0xff]  ;;  %v868_v15 = vld [vmem:[%s1369_s5 + $0x1a0] sm:$0xff] }
  0xc2   : > { %v497_v26 = vsel %vm228_vm4, %v495_v25, 0.0  ;;  %v496_v8 = vsel %vm228_vm4, %v493_v43, 0.0  ;;  %v874_v25 = vld [vmem:[%s1369_s5 + $0x1c0] sm:$0xff] }
  0xc3   : > { %v491_v20 = vadd.f32 %v489_v22, %v484_v21  ;;  %v502_v23 = vmul.f32 %v857_v17, %v497_v26  ;;  %v490_v19 = vadd.f32 %v488_v7, %v483_v42  ;;  %v501_v27 = vmul.f32 %v856_v18, %v496_v8  ;;  %v875_v42 = vld [vmem:[%s1369_s5 + $0x1c8] sm:$0xff] }
  0xc4   : > { %v603_v32 = vmul.f32 %v875_v42, %v1331_v49 }
  0xc5   : > { %v508_v39 = vpop.permute.xlu1 %507  ;;  %v506_v40 = vpop.permute.xlu0 %505  ;;  %v504_v46 = vadd.f32 %v502_v23, %v491_v20  ;;  %v503_v52 = vadd.f32 %v501_v27, %v490_v19  ;;  %v873_v23 = vld [vmem:[%s1369_s5 + $0x1b8] sm:$0xff]  ;;  %v872_v19 = vld [vmem:[%s1369_s5 + $0x1b0] sm:$0xff] }
  0xc6   : > { %v510_v41 = vsel %vm227_vm5, %v508_v39, 0.0  ;;  %v509_v2 = vsel %vm227_vm5, %v506_v40, 0.0 }
  0xc7   : > { %v515_v54 = vmul.f32 %v859_v33, %v510_v41  ;;  %v514_v53 = vmul.f32 %v858_v34, %v509_v2  ;;  %v602_v33 = vmul.f32 %v874_v25, %v1203_v24 }
  0xc9   : > { %v517_v56 = vadd.f32 %v515_v54, %v504_v46  ;;  %v516_v31 = vadd.f32 %v514_v53, %v503_v52  ;;  %v528_v37 = vpop.permute.xlu1 %527  ;;  %v526_v57 = vpop.permute.xlu0 %525  ;;  %v876_v46 = vld [vmem:[%s1369_s5 + $0x1d0] sm:$0xff] }
  0xca   : > { %v530_v58 = vsel %vm228_vm4, %v528_v37, 0.0  ;;  %v529_v36 = vsel %vm228_vm4, %v526_v57, 0.0  ;;  %v881_v57 = vld [vmem:[%s1369_s5 + $0x1f8] sm:$0xff] }
  0xcb   : > { %v524_v59 = vadd.f32 %v522_v44, %v517_v56  ;;  %v535_v60 = vmul.f32 %v863_v55, %v530_v58  ;;  %v523_v61 = vadd.f32 %v521_v45, %v516_v31  ;;  %v534_v3 = vmul.f32 %v862_v30, %v529_v36  ;;  %v877_v45 = vld [vmem:[%s1369_s5 + $0x1d8] sm:$0xff]  ;;  %v880_v58 = vld [vmem:[%s1369_s5 + $0x1f0] sm:$0xff]  ;;  %v879_v36 = vld [vmem:[%s1369_s5 + $0x1e8] sm:$0xff] }
  0xcd   : > { %v541_v0 = vpop.permute.xlu1 %540  ;;  %v539_v1 = vpop.permute.xlu0 %538  ;;  %v537_v7 = vadd.f32 %v535_v60, %v524_v59  ;;  %v536_v10 = vadd.f32 %v534_v3, %v523_v61  ;;  %v636_v3 = vmul.f32 %v881_v57, %v1163_v13 }
  0xce   : > { %v543_v6 = vsel %vm227_vm5, %v541_v0, 0.0  ;;  %v542_v22 = vsel %vm227_vm5, %v539_v1, 0.0 }
  0xcf   : > { %v548_v11 = vmul.f32 %v865_v62, %v543_v6  ;;  %v547_v12 = vmul.f32 %v864_v63, %v542_v22  ;;  %v635_v62 = vmul.f32 %v880_v58, %v1155_v9  ;;  %v882_v6 = vld [vmem:[%s1369_s5 + $0x200] sm:$0xff]  ;;  %v887_v9 = vld [vmem:[%s1369_s5 + $0x228] sm:$0xff] }
  0xd0   : > { %v669_v25 = vmul.f32 %v887_v9, %v1215_v28 }
  0xd1   : > { %v550_v16 = vadd.f32 %v548_v11, %v537_v7  ;;  %v549_v47 = vadd.f32 %v547_v12, %v536_v10  ;;  %v561_v17 = vpop.permute.xlu1 %560  ;;  %v559_v18 = vpop.permute.xlu0 %558 }
  0xd2   : > { %v563_v48 = vsel %vm228_vm4, %v561_v17, 0.0  ;;  %v562_v21 = vsel %vm228_vm4, %v559_v18, 0.0  ;;  %v885_v18 = vld [vmem:[%s1369_s5 + $0x218] sm:$0xff] }
  0xd3   : > { %v557_v43 = vadd.f32 %v555_v4, %v550_v16  ;;  %v568_v26 = vmul.f32 %v869_v14, %v563_v48  ;;  %v556_v8 = vadd.f32 %v554_v5, %v549_v47  ;;  %v567_v20 = vmul.f32 %v868_v15, %v562_v21  ;;  %v883_v5 = vld [vmem:[%s1369_s5 + $0x208] sm:$0xff]  ;;  %v886_v14 = vld [vmem:[%s1369_s5 + $0x220] sm:$0xff]  ;;  %v884_v48 = vld [vmem:[%s1369_s5 + $0x210] sm:$0xff] }
  0xd5   : > { %v589_v27 = vpop.permute.xlu1 %588  ;;  %v587_v29 = vpop.permute.xlu0 %586  ;;  %v570_v40 = vadd.f32 %v568_v26, %v557_v43  ;;  %v569_v41 = vadd.f32 %v567_v20, %v556_v8  ;;  %v668_v43 = vmul.f32 %v886_v14, %v1355_v50 }
  0xd6   : > { %v591_v34 = vsel %vm227_vm5, %v589_v27, 0.0  ;;  %v590_v39 = vsel %vm227_vm5, %v587_v29, 0.0  ;;  %v889_v29 = vld [vmem:[%s1369_s5 + $0x238] sm:$0xff] }
  0xd7   : > { %v596_v2 = vmul.f32 %v873_v23, %v591_v34  ;;  %v595_v44 = vmul.f32 %v872_v19, %v590_v39 }
  0xd9   : > { %v598_v52 = vadd.f32 %v596_v2, %v570_v40  ;;  %v597_v49 = vadd.f32 %v595_v44, %v569_v41  ;;  %v609_v54 = vpop.permute.xlu1 %608  ;;  %v607_v24 = vpop.permute.xlu0 %606 }
  0xda   : > { %v611_v53 = vsel %vm228_vm4, %v609_v54, 0.0  ;;  %v610_v55 = vsel %vm228_vm4, %v607_v24, 0.0 }
  0xdb   : > { %v605_v30 = vadd.f32 %v603_v32, %v598_v52  ;;  %v616_v56 = vmul.f32 %v877_v45, %v611_v53  ;;  %v604_v31 = vadd.f32 %v602_v33, %v597_v49  ;;  %v615_v37 = vmul.f32 %v876_v46, %v610_v55  ;;  %v888_v32 = vld [vmem:[%s1369_s5 + $0x230] sm:$0xff] }
  0xdd   : > { %v622_v35 = vpop.permute.xlu1 %621  ;;  %v620_v59 = vpop.permute.xlu0 %619  ;;  %v618_v63 = vadd.f32 %v616_v56, %v605_v30  ;;  %v617_v0 = vadd.f32 %v615_v37, %v604_v31 }
  0xde   : > { %v624_v60 = vsel %vm227_vm5, %v622_v35, 0.0  ;;  %v623_v61 = vsel %vm227_vm5, %v620_v59, 0.0 }
  0xdf   : > { %v629_v1 = vmul.f32 %v879_v36, %v624_v60  ;;  %v628_v4 = vmul.f32 %v878_v38, %v623_v61 }
  0xe1   : > { %v631_v22 = vadd.f32 %v629_v1, %v618_v63  ;;  %v630_v7 = vadd.f32 %v628_v4, %v617_v0  ;;  %v642_v10 = vpop.permute.xlu1 %641  ;;  %v640_v11 = vpop.permute.xlu0 %639 }
  0xe2   : > { %v644_v12 = vsel %vm228_vm4, %v642_v10, 0.0  ;;  %v643_v13 = vsel %vm228_vm4, %v640_v11, 0.0 }
  0xe3   : > { %v638_v15 = vadd.f32 %v636_v3, %v631_v22  ;;  %v649_v16 = vmul.f32 %v883_v5, %v644_v12  ;;  %v637_v47 = vadd.f32 %v635_v62, %v630_v7  ;;  %v648_v17 = vmul.f32 %v882_v6, %v643_v13 }
  0xe5   : > { %v655_v21 = vpop.permute.xlu1 %654  ;;  %v653_v42 = vpop.permute.xlu0 %652  ;;  %v651_v20 = vadd.f32 %v649_v16, %v638_v15  ;;  %v650_v23 = vadd.f32 %v648_v17, %v637_v47 }
  0xe6   : > { %v657_v26 = vsel %vm227_vm5, %v655_v21, 0.0  ;;  %v656_v8 = vsel %vm227_vm5, %v653_v42, 0.0 }
  0xe7   : > { %v662_v19 = vmul.f32 %v885_v18, %v657_v26  ;;  %v661_v27 = vmul.f32 %v884_v48, %v656_v8 }
  0xe9   : > { %v664_v33 = vadd.f32 %v662_v19, %v651_v20  ;;  %v663_v34 = vadd.f32 %v661_v27, %v650_v23  ;;  %v675_v39 = vpop.permute.xlu1 %674  ;;  %v673_v40 = vpop.permute.xlu0 %672 }
  0xea   : > { %v677_v28 = vsel %vm228_vm4, %v675_v39, 0.0  ;;  %v676_v50 = vsel %vm228_vm4, %v673_v40, 0.0 }
  0xeb   : > { %v671_v41 = vadd.f32 %v669_v25, %v664_v33  ;;  %v682_v2 = vmul.f32 %v889_v29, %v677_v28  ;;  %v670_v44 = vadd.f32 %v668_v43, %v663_v34  ;;  %v681_v45 = vmul.f32 %v888_v32, %v676_v50 }
  0xed   : > { %v684_v46 = vadd.f32 %v682_v2, %v671_v41  ;;  %v683_v52 = vadd.f32 %v681_v45, %v670_v44 }
  0xef   : > { %690 = vst [vmem:[%s189_s15 + $0x8] sm:$0xff] %v684_v46  ;;  %689 = vst [vmem:[%s189_s15] sm:$0xff] %v683_v52 }
  0xf0   : > { %971 = shalt.err (!%p968_p5)
}
  0xf1   : > { %s972_s28 = scalar_lea.hbm %s1575_s23, 256  ;;  %s976_s3 = scalar_lea.hbm %s1629_s2, 512 }
  0xf2   : > { %p973_p6 = scmp.ne.s32.totalorder %s1575_s23, %s972_s28  ;;  %p977_p10 = scmp.lt.u32.totalorder %s1575_s23, %s1629_s2 }
  0xf3   : > { %p978_p11 = scmp.lt.u32.totalorder %s976_s3, %s972_s28  ;;  %p980_p13 = scmp.lt.u32.totalorder %s972_s28, %s1575_s23 }
  0xf4   : > { %p974_p7 = pnand %p973_p6, %p1098_p4 }
  0xf5   : > { %p979_p12 = por %p978_p11, %p977_p10 }
  0xf6   : > { %p975_p9 = pneg %p974_p7 }
  0xf7   : > { %p981_p0 = por %p980_p13, %p979_p12 }
  0xf9   : > { %p982_p1 = pnand %p981_p0, %p975_p9 }
  0xfb   : > { %985 = shalt.err (!%p982_p1)
}
  0xfc   : > { %s1041_s6 = smov 128   ;;  %s1042_s7 = smov 8  }
  0xfd   : > { %898 = dma.vmem_to_hbm [thread:$0]  (%p1098_p4), %s1577_s16, 256, %s1575_s23, %s1581_s24, %s1041_s6, %s1041_s6, %s1042_s7  }
  0xfe PF: > { %p904_p2 = scmp.ge.s32.totalorder %s1036_s14, 2  ;;  %s720_s8 = sand.u32 1, %s1016_s9  }
  0xff   : > { %s721_s15 = scalar_lea.sflag [#allocation3], %s720_s8 }
 0x100   : > { %p901_p3 = pnand %p904_p2, %p1105_p8 }
 0x102   : > { %1011 = dma.done.wait (!%p901_p3), %s721_s15, 256  }
 0x103   : > { %1013 = vsyncadd (!%p901_p3), %s721_s15, 4294967040  ;;  %s15_s14 = sadd.s32 1, %s1036_s14   ;;  %s1632_s9 = smov %s1020_s10 }
 0x104   : > { %p12_p5 = scmp.ge.s32.totalorder %s15_s14, 4   ;;  %s1633_s10 = smov %s1024_s11 }
 0x105   : > { %s1634_s11 = smov %s1111_s22  ;;  %s1635_s12 = smov %s1032_s13 }
 0x106   : > { %s1636_s13 = smov %s1638_s17  ;;  %14 = sbr.rel (!%p12_p5) target bundleno = 4 (0x4), region = 108 }
 0x10d   :  { %726 = vsyncpa [#allocation3], 1 }
 0x10e   :  { %728 = vsyncpa [#allocation3 + $0x1], 1 }

</bundles_post_ra>
